<compile_context>
chip_gen: v5e
topology: v5e:2x2
jax: 0.10.0
libtpu: 0.0.40
codegen_flags: <defaults>
</compile_context>

<pallas_src>
import jax
import jax.numpy as jnp
from jax.experimental import pallas as pl
from jax.experimental.pallas import tpu as pltpu


def _pick_hw_tile(hw, cap):
    """Largest multiple-of-128 divisor of hw that is <= cap; else the full hw.

    (The last block dim must be a multiple of 128 or span the whole axis.)"""
    if hw <= cap:
        return hw
    t = (cap // 128) * 128
    while t >= 128:
        if hw % t == 0:
            return t
        t -= 128
    return hw


def _pick_n_tile(n, cap):
    """Largest multiple-of-8 divisor of n that is <= cap; else the full n.

    (tile_n is the sublane dim of the 2-D logits / feature outputs.)"""
    if n <= cap:
        return n
    t = (min(cap, n) // 8) * 8
    while t >= 8:
        if n % t == 0:
            return t
        t -= 8
    return n


def _make_kernel(inv_hw, with_features):
    def kernel(x_ref, w_ref, b_ref, *out_and_scratch):
        # x_ref:   (TILE_N, C, TILE_HW)  native NCHW tile, HW on lanes
        # w_ref:   (C, K_pad)            pre-transposed, lane-padded weight
        # b_ref:   (1, K_pad)            lane-padded bias
        # outputs: logits (TILE_N, K_pad) [+ feat (TILE_N, C)]
        # scratch: acc    (TILE_N, C) f32
        if with_features:
            logits_ref, feat_ref, acc_ref = out_and_scratch
        else:
            logits_ref, acc_ref = out_and_scratch
            feat_ref = None

        hw_id = pl.program_id(1)

        @pl.when(hw_id == 0)
        def _():
            acc_ref[...] = jnp.zeros_like(acc_ref)

        # Partial spatial sum over this HW chunk (f32 accumulation).  Lane-axis
        # reduce: elementwise VPU adds across lane groups + one amortized
        # cross-lane fold; the kernel stays HBM-bound.
        acc_ref[...] += jnp.sum(x_ref[...].astype(jnp.float32), axis=-1)

        @pl.when(hw_id == pl.num_programs(1) - 1)
        def _():
            pooled = acc_ref[...] * inv_hw                        # (TILE_N, C)
            logits = jnp.dot(pooled, w_ref[...].astype(jnp.float32),
                             preferred_element_type=jnp.float32)  # MXU
            logits = logits + b_ref[...].astype(jnp.float32)
            logits_ref[...] = logits.astype(logits_ref.dtype)     # full-lane vst
            if feat_ref is not None:
                feat_ref[...] = pooled.astype(feat_ref.dtype)

    return kernel


def classifier_module_forward(x_list, weight, bias, return_features=False,
                              max_tile_n=128, max_tile_hw=512):
    """x_list: list of NCHW feature maps (only the last is used, as in PyTorch).

    weight: (num_classes, channel)  -- PyTorch nn.Linear layout
    bias:   (num_classes,)
    """
    x_last = x_list[-1] if isinstance(x_list, (list, tuple)) else x_list
    n, c, h, w = x_last.shape
    hw = h * w
    num_classes = weight.shape[0]

    # Free reshape (NCHW is contiguous): C stays on sublanes, HW on lanes.
    x_nchw = x_last.reshape(n, c, hw)

    # Lane-pad the (pre-transposed) weight / bias so the logits store is a full
    # unmasked vst; slice back to num_classes outside the kernel.
    k_pad = max(128, pl.cdiv(num_classes, 128) * 128)
    w_t = jnp.pad(jnp.transpose(weight), ((0, 0), (0, k_pad - num_classes)))
    b_p = jnp.pad(bias, (0, k_pad - num_classes)).reshape(1, k_pad)

    itemsize = jnp.dtype(x_nchw.dtype).itemsize
    tile_hw = _pick_hw_tile(hw, max_tile_hw)
    # ~3 MiB per pipeline buffer of x (BlockSpec double-buffers) keeps us
    # inside the default scoped-VMEM limit on v5e/v6e/v7x.
    x_buf_budget = 3 * 1024 * 1024
    n_cap = max(8, x_buf_budget // max(1, c * tile_hw * itemsize))
    tile_n = _pick_n_tile(n, min(max_tile_n, n_cap))

    grid = (n // tile_n, hw // tile_hw)

    in_specs = [
        pl.BlockSpec((tile_n, c, tile_hw), lambda i, k: (i, 0, k)),
        pl.BlockSpec((c, k_pad), lambda i, k: (0, 0)),   # resident across grid
        pl.BlockSpec((1, k_pad), lambda i, k: (0, 0)),
    ]
    logits_spec = pl.BlockSpec((tile_n, k_pad), lambda i, k: (i, 0))
    logits_shape = jax.ShapeDtypeStruct((n, k_pad), jnp.float32)

    if return_features:
        out_shape = (logits_shape, jax.ShapeDtypeStruct((n, c), jnp.float32))
        out_specs = (logits_spec, pl.BlockSpec((tile_n, c), lambda i, k: (i, 0)))
    else:
        out_shape = logits_shape
        out_specs = logits_spec

    bytes_out = n * k_pad * 4 + (n * c * 4 if return_features else 0)
    cost = pl.CostEstimate(
        flops=2 * n * c * k_pad + n * hw * c,
        transcendentals=0,
        bytes_accessed=n * hw * c * itemsize + c * k_pad * 4 + k_pad * 4 + bytes_out,
    )

    est_vmem = (2 * tile_n * c * tile_hw * itemsize          # x double buffer
                + c * k_pad * 4 + k_pad * 4                  # weight + bias
                + 2 * tile_n * k_pad * 4                     # logits double buffer
                + (2 * tile_n * c * 4 if return_features else 0)
                + tile_n * c * 4)                            # accumulator scratch
    vmem_limit = int(min(64 * 1024 * 1024, max(32 * 1024 * 1024, 2 * est_vmem)))

    out = pl.pallas_call(
        _make_kernel(1.0 / float(hw), return_features),
        grid=grid,
        in_specs=in_specs,
        out_specs=out_specs,
        out_shape=out_shape,
        scratch_shapes=[pltpu.VMEM((tile_n, c), jnp.float32)],
        compiler_params=pltpu.CompilerParams(
            dimension_semantics=("parallel", "arbitrary"),
            vmem_limit_bytes=vmem_limit),
        cost_estimate=cost,
    )(x_nchw, w_t, b_p)

    if return_features:
        logits_padded, feats = out
        return logits_padded[:, :num_classes], feats
    return out[:, :num_classes]


if __name__ == "__main__":
    # --- Small test consistent with the module: batch=2, channel=16, 8x8 map,
    #     10 classes (channel == C of the last feature map since m = avg pool).
    N, C, H, W = 2, 16, 8, 8
    NUM_CLASSES = 10

    key = jax.random.PRNGKey(0)
    k_x0, k_x1, k_w, k_b = jax.random.split(key, 4)

    # x is a list of feature maps; only the last one is consumed.
    x0 = jax.random.normal(k_x0, (N, C, H, W), dtype=jnp.float32)
    x1 = jax.random.normal(k_x1, (N, C, H, W), dtype=jnp.float32)
    x_list = [x0, x1]

    # nn.Linear(channel, num_classes) init: U(-1/sqrt(channel), 1/sqrt(channel))
    bound = 1.0 / (C ** 0.5)
    weight = jax.random.uniform(k_w, (NUM_CLASSES, C), jnp.float32, -bound, bound)
    bias = jax.random.uniform(k_b, (NUM_CLASSES,), jnp.float32, -bound, bound)

    logits = classifier_module_forward(x_list, weight, bias)
    jax.block_until_ready(logits)

    ref_feat = jnp.mean(x_list[-1], axis=(2, 3))
    ref_logits = ref_feat @ weight.T + bias
    assert logits.shape == (N, NUM_CLASSES)
    assert jnp.allclose(logits, ref_logits, atol=1e-5), "mismatch vs reference"

    # return_features path
    logits2, feats = classifier_module_forward(x_list, weight, bias,
                                               return_features=True)
    jax.block_until_ready(logits2)
    assert jnp.allclose(logits2, ref_logits, atol=1e-5)
    assert jnp.allclose(feats, ref_feat, atol=1e-5)

    # --- Second test exercising a multi-tile grid (batch tiles + HW reduction
    #     tiles with the VMEM accumulator), still tiny.
    N2, C2, H2, W2, K2 = 16, 32, 16, 16, 7
    kx, kw2, kb2 = jax.random.split(jax.random.PRNGKey(1), 3)
    x2 = jax.random.normal(kx, (N2, C2, H2, W2), dtype=jnp.float32)
    bound2 = 1.0 / (C2 ** 0.5)
    weight2 = jax.random.uniform(kw2, (K2, C2), jnp.float32, -bound2, bound2)
    bias2 = jax.random.uniform(kb2, (K2,), jnp.float32, -bound2, bound2)

    logits3 = classifier_module_forward([x2], weight2, bias2,
                                        max_tile_n=8, max_tile_hw=128)
    jax.block_until_ready(logits3)
    ref3 = jnp.mean(x2, axis=(2, 3)) @ weight2.T + bias2
    assert jnp.allclose(logits3, ref3, atol=1e-4), "multi-tile mismatch"

    print("KERNEL_OK")
</pallas_src>

<mosaic_0001>
module attributes {stable_mosaic.version = 11 : i64} {
  func.func @kernel(%arg0: i32, %arg1: i32, %arg2: memref<2x16x64xf32, #tpu.memory_space<vmem>>, %arg3: memref<16x128xf32, #tpu.memory_space<vmem>>, %arg4: memref<1x128xf32, #tpu.memory_space<vmem>>, %arg5: memref<2x128xf32, #tpu.memory_space<vmem>>, %arg6: memref<2x16xf32, #tpu.memory_space<vmem>>) attributes {dimension_semantics = [#tpu.dimension_semantics<parallel>, #tpu.dimension_semantics<arbitrary>], iteration_bounds = array<i64: 1, 1>, scalar_prefetch = 0 : i64, scratch_operands = 1 : i64, tpu.core_type = #tpu.core_type<tc>, window_params = [{transform_indices = @transform_0, window_bounds = array<i64: 2, 16, 64>}, {pipeline_mode = #tpu.pipeline_mode<synchronous>, transform_indices = @transform_1, window_bounds = array<i64: 16, 128>}, {pipeline_mode = #tpu.pipeline_mode<synchronous>, transform_indices = @transform_2, window_bounds = array<i64: 1, 128>}, {transform_indices = @transform_3, window_bounds = array<i64: 2, 128>}]} {
    %c0_i32 = arith.constant 0 : i32
    %0 = arith.cmpi eq, %arg1, %c0_i32 : i32
    %1 = arith.extui %0 : i1 to i32
    %c0_i32_0 = arith.constant 0 : i32
    %2 = arith.cmpi ne, %1, %c0_i32_0 : i32
    scf.if %2 {
      %cst_9 = arith.constant 0.000000e+00 : f32
      %11 = vector.broadcast %cst_9 : f32 to vector<2x16xf32>
      %c0_10 = arith.constant 0 : index
      %c0_11 = arith.constant 0 : index
      %12 = vector.load %arg6[%c0_10, %c0_11] : memref<2x16xf32, #tpu.memory_space<vmem>>, vector<2x16xf32>
      tpu.vector_store %arg6[%c0_10, %c0_11], %11 {strides = array<i32>} : memref<2x16xf32, #tpu.memory_space<vmem>>, vector<2x16xf32>,
    } else {
    }
    %c0 = arith.constant 0 : index
    %c0_1 = arith.constant 0 : index
    %3 = vector.load %arg6[%c0, %c0_1] : memref<2x16xf32, #tpu.memory_space<vmem>>, vector<2x16xf32>
    %c0_2 = arith.constant 0 : index
    %c0_3 = arith.constant 0 : index
    %c0_4 = arith.constant 0 : index
    %4 = vector.load %arg2[%c0_2, %c0_3, %c0_4] : memref<2x16x64xf32, #tpu.memory_space<vmem>>, vector<2x16x64xf32>
    %cst = arith.constant dense<0.000000e+00> : vector<2x16xf32>
    %5 = vector.multi_reduction <add>, %4, %cst [2] : vector<2x16x64xf32> to vector<2x16xf32>
    %6 = arith.addf %3, %5 : vector<2x16xf32>
    %c0_5 = arith.constant 0 : index
    %c0_6 = arith.constant 0 : index
    %7 = vector.load %arg6[%c0_5, %c0_6] : memref<2x16xf32, #tpu.memory_space<vmem>>, vector<2x16xf32>
    tpu.vector_store %arg6[%c0_5, %c0_6], %6 {strides = array<i32>} : memref<2x16xf32, #tpu.memory_space<vmem>>, vector<2x16xf32>,
    %c0_i32_7 = arith.constant 0 : i32
    %8 = arith.cmpi eq, %arg1, %c0_i32_7 : i32
    %9 = arith.extui %8 : i1 to i32
    %c0_i32_8 = arith.constant 0 : i32
    %10 = arith.cmpi ne, %9, %c0_i32_8 : i32
    scf.if %10 {
      %c0_9 = arith.constant 0 : index
      %c0_10 = arith.constant 0 : index
      %11 = vector.load %arg6[%c0_9, %c0_10] : memref<2x16xf32, #tpu.memory_space<vmem>>, vector<2x16xf32>
      %cst_11 = arith.constant 1.562500e-02 : f32
      %12 = vector.broadcast %cst_11 : f32 to vector<2x16xf32>
      %13 = arith.mulf %11, %12 : vector<2x16xf32>
      %c0_12 = arith.constant 0 : index
      %c0_13 = arith.constant 0 : index
      %14 = vector.load %arg3[%c0_12, %c0_13] : memref<16x128xf32, #tpu.memory_space<vmem>>, vector<16x128xf32>
      %cst_14 = arith.constant dense<0.000000e+00> : vector<2x128xf32>
      %15 = tpu.matmul %13, %14, %cst_14 {dimension_numbers = #tpu.dot_dimension_numbers<[1], [0], [0], [1], [0, 0, 1, 1], [], []>} : vector<2x16xf32>, vector<16x128xf32>, vector<2x128xf32> -> vector<2x128xf32>
      %c0_15 = arith.constant 0 : index
      %c0_16 = arith.constant 0 : index
      %16 = vector.load %arg4[%c0_15, %c0_16] : memref<1x128xf32, #tpu.memory_space<vmem>>, vector<1x128xf32>
      %17 = vector.broadcast %16 : vector<1x128xf32> to vector<2x128xf32>
      %18 = arith.addf %15, %17 : vector<2x128xf32>
      %c0_17 = arith.constant 0 : index
      %c0_18 = arith.constant 0 : index
      %19 = vector.load %arg5[%c0_17, %c0_18] : memref<2x128xf32, #tpu.memory_space<vmem>>, vector<2x128xf32>
      tpu.vector_store %arg5[%c0_17, %c0_18], %18 {strides = array<i32>} : memref<2x128xf32, #tpu.memory_space<vmem>>, vector<2x128xf32>,
    } else {
    }
    return
  }
  func.func @transform_0(%arg0: i32, %arg1: i32) -> (i32, i32, i32) {
    %c0_i32 = arith.constant 0 : i32
    %c0_i32_0 = arith.constant 0 : i32
    return %arg0, %c0_i32, %arg1 : i32, i32, i32
  }
  func.func @transform_1(%arg0: i32, %arg1: i32) -> (i32, i32) {
    %c0_i32 = arith.constant 0 : i32
    %c0_i32_0 = arith.constant 0 : i32
    %c0_i32_1 = arith.constant 0 : i32
    return %c0_i32, %c0_i32_0 : i32, i32
  }
  func.func @transform_2(%arg0: i32, %arg1: i32) -> (i32, i32) {
    %c0_i32 = arith.constant 0 : i32
    %c0_i32_0 = arith.constant 0 : i32
    %c0_i32_1 = arith.constant 0 : i32
    return %c0_i32, %c0_i32_0 : i32, i32
  }
  func.func @transform_3(%arg0: i32, %arg1: i32) -> (i32, i32) {
    %c0_i32 = arith.constant 0 : i32
    %c0_i32_0 = arith.constant 0 : i32
    return %arg0, %c0_i32 : i32, i32
  }
}

</mosaic_0001>

<bundles_post_ra>
// kernel: tpu_custom_call.1
= control target key start
LH: loop header
LB: loop body
LE: loop exit
PB: predicated region body
PF: predicated region fallthrough
CT: control target
= control target key end

     0   :  { %8 = vsyncpa [#allocation4], 0  ;;  %s271_s0 = inlined_call_operand.hbm [shape: f32[2,16,64], index: 0, kind: input, shape index: {}]   ;;  %s272_s1 = inlined_call_operand.hbm [shape: f32[16,128], index: 1, kind: input, shape index: {}]   ;;  %s273_s2 = inlined_call_operand.vmem [shape: f32[1,128], index: 2, kind: input, shape index: {}]   ;;  %s274_s3 = inlined_call_operand.hbm [shape: f32[2,128], index: 3, kind: output, shape index: {}]  }
   0x1   :  { %9 = vsyncpa [#allocation7], 0 }
   0x2   :  { %10 = vsyncpa [#allocation5], 0  ;;  %s15_s14 = sshll.u32 %s271_s0, 4  ;;  %s231_s15 = smov [#allocation3]   ;;  %s16_s14 = int_to_ptr.hbm [resolvable:$true] %s15_s14 }
   0x3   :  { %s17_s16 = sshll.u32 %s231_s15, 4  ;;  %s28_s19 = sshll.u32 %s272_s1, 4  ;;  %s18_s16 = int_to_ptr.vmem [resolvable:$true] %s17_s16  ;;  %s29_s19 = int_to_ptr.hbm [resolvable:$true] %s28_s19 }
   0x4   :  { %s232_s20 = smov 128   ;;  %s233_s21 = smov 8  }
   0x5   :  { %23 = dma.hbm_to_vmem [thread:$0]  %s16_s14, 512, %s18_s16, [#allocation4], %s232_s20, %s232_s20, %s233_s21  }
   0x6   :  { %s234_s22 = smov [#allocation6]  }
   0x7   :  { %s30_s23 = sshll.u32 %s234_s22, 4  ;;  %s31_s23 = int_to_ptr.vmem [resolvable:$true] %s30_s23 }
   0x8   :  { %36 = dma.hbm_to_vmem [thread:$0]  %s29_s19, 256, %s31_s23, [#allocation7], %s232_s20, %s232_s20, %s233_s21  }
   0x9   :  { %225 = dma.done.wait [#allocation4], 512  }
   0xa   :  { %226 = vsyncadd [#allocation4], 4294966784 }
   0xb   :  { %227 = dma.done.wait [#allocation7], 256  }
   0xc   :  { %228 = vsyncadd [#allocation7], 4294967040  ;;  %vm58_vm0 = vcmask 523264   ;;  %v56_v0 = vld [vmem:[#allocation3 + $0x10] sm:$0xff]  ;;  %v54_v1 = vld [vmem:[#allocation3] sm:$0xff]  ;;  %vm51_vm1 = vcmask 123904   ;;  %v75_v11 = vlaneseq }
   0xd   :  { %v65_v2 = vsel %vm58_vm0, %v56_v0, 0.0  ;;  %v59_v3 = vsel %vm58_vm0, %v54_v1, 0.0  ;;  %v57_v4 = vld [vmem:[#allocation3 + $0x18] sm:$0xff]  ;;  %v55_v5 = vld [vmem:[#allocation3 + $0x8] sm:$0xff]  ;;  %v235_v8 = vmov 0.0   ;;  %v96_v10 = vld [vmem:[#allocation6] sm:$0xff] }
   0xe   :  { %66 = vadd.xlane.f32.xlu1 %v65_v2  ;;  %60 = vadd.xlane.f32.xlu0 %v59_v3  ;;  %v68_v6 = vsel %vm58_vm0, %v57_v4, 0.0  ;;  %v62_v7 = vsel %vm58_vm0, %v55_v5, 0.0  ;;  %52 = vst.msk [vmem:[#allocation2] sm:$0x3] %vm51_vm1, %v235_v8  ;;  %v97_v9 = vld [vmem:[#allocation6 + $0x8] sm:$0xff]  ;;  %v76_v14 = vand.u32 127, %v75_v11 }
   0xf   :  { %120 = vmatpush.msra.mxu0 %v97_v9  ;;  %vm80_vm2 = vcmask 130112   ;;  %vm85_vm3 = vcmask 1041409   ;;  %vm102_vm4 = vcmask 130048   ;;  %v152_v29 = vld [vmem:[%s273_s2] ss:$0 sm:$0xff]  ;;  %s236_s24 = smov [#allocation8]  }
  0x10   :  { %v78_v15 = vadd.s32 4294967288, %v76_v14  ;;  %s132_s25 = sshll.u32 %s236_s24, 4  ;;  %s134_s28 = sshll.u32 %s274_s3, 4  ;;  %s133_s25 = int_to_ptr.vmem [resolvable:$true] %s132_s25  ;;  %s135_s28 = int_to_ptr.hbm [resolvable:$true] %s134_s28 }
  0x11   :  { %121 = vmatpush.msra.mxu0 %v96_v10 }
  0x15   :  { %v53_v22 = vld [vmem:[#allocation2] sm:$0x3] }
  0x16   :  { %69 = vadd.xlane.f32.xlu1 %v68_v6  ;;  %63 = vadd.xlane.f32.xlu0 %v62_v7 }
  0x81   :  { %v67_v12 = vpop.xlane.xlu1 %66  ;;  %v61_v13 = vpop.xlane.xlu0 %60 }
  0x82   :  { %v82_v18 = vperm.slane %v67_v12, %v76_v14  ;;  %v77_v19 = vperm.slane %v61_v13, %v76_v14 }
  0x89   :  { %v70_v16 = vpop.xlane.xlu1 %69  ;;  %v64_v17 = vpop.xlane.xlu0 %63 }
  0x8a   :  { %v83_v20 = vperm.slane %v70_v16, %v78_v15  ;;  %v79_v21 = vperm.slane %v64_v17, %v78_v15 }
  0x8c   :  { %v84_v23 = vsel %vm80_vm2, %v83_v20, %v82_v18  ;;  %v81_v24 = vsel %vm80_vm2, %v79_v21, %v77_v19 }
  0x8d   :  { %v86_v25 = vsel %vm85_vm3, %v84_v23, %v81_v24 }
  0x8e   :  { %v88_v26 = vadd.f32 %v86_v25, %v53_v22 }
  0x90   :  { %90 = vst.msk [vmem:[#allocation2] sm:$0x3] %vm51_vm1, %v88_v26 }
  0x97   :  { %v94_v27 = vld [vmem:[#allocation2] sm:$0x3] }
  0x98   :  { %v95_v28 = vmul.f32 0.015625, %v94_v27 }
  0x9a   :  { %145 = vmatmul.msk.f32.vlgmr.msra.gmra.mxu0 %vm102_vm4, %v95_v28 }
 0x117   :  { %v123_v30 = vpop.f32.mrf.mxu0 }
 0x118   :  { %v124_v31 = vadd.f32 %v152_v29, %v123_v30 }
 0x11a   :  { %126 = vst [vmem:[#allocation8] sm:$0x3] %v124_v31 }
 0x11b   :  { %137 = dma.vmem_to_hbm [thread:$0]  %s133_s25, 32, %s135_s28, [#allocation5]  }
 0x11c   :  { %229 = dma.done.wait [#allocation5], 32  }
 0x11d   :  { %230 = vsyncadd [#allocation5], 4294967264 }
 0x11e   :  { %142 = vsyncpa [#allocation4], 1 }
 0x11f   :  { %143 = vsyncpa [#allocation7], 1 }
 0x120   :  { %144 = vsyncpa [#allocation5], 1 }

</bundles_post_ra>
